<compile_context>
chip_gen: v6e
topology: v6e:2x2x1
jax: 0.10.0
libtpu: 0.0.40
codegen_flags: <defaults>
</compile_context>

<pallas_src>
import functools

import jax
import jax.numpy as jnp
from jax import lax
from jax.experimental import pallas as pl
from jax.experimental.pallas import tpu as pltpu

# torch CosineSimilarity eps.  Applied here as a per-row clamp on ||r||^2 (identical to
# torch's per-pair clamp for any non-degenerate embedding; differs only for rows with
# ||r||^2 < eps).
_EPS = 1e-8
# Row-tile cap: keeps the (tm, 2N) f32 logits tile + resident reps within v7x's 64 MiB
# VMEM (v5e/v6e have more; 256 is a safe common choice).
_TM_MAX = 256
# Above the 16/32 MiB scoped defaults, below v7x's 64 MiB physical VMEM.
_VMEM_LIMIT_BYTES = 48 * 1024 * 1024


def _normalize_kernel(zjs_ref, zis_ref, out_ref, *, half_blocks, scale):
    """Writes block b of concat([zjs, zis]) L2-normalized and scaled by 1/sqrt(T)."""
    b = pl.program_id(0)

    def _norm(x):
        x = x.astype(jnp.float32)
        # rsqrt -> EUP slot (free), instead of sqrt + divide on the VALU.
        inv = lax.rsqrt(jnp.maximum(jnp.sum(x * x, axis=-1, keepdims=True),
                                    jnp.float32(_EPS)))
        return x * (inv * jnp.float32(scale))

    @pl.when(b < half_blocks)
    def _():
        out_ref[...] = _norm(zjs_ref[...])

    @pl.when(b >= half_blocks)
    def _():
        out_ref[...] = _norm(zis_ref[...])


def _ntxent_row_block_kernel(reps_ref, out_ref, *, tm, half_blocks):
    """Per-row loss terms (lse over j != i, minus positive logit) for one row block.

    reps_ref: (2N, D) resident, rows already L2-normalized * 1/sqrt(T), so the Gram
    matrix of reps_ref IS the logits matrix sim/T directly.
    """
    b = pl.program_id(0)

    row0 = pl.multiple_of(b * tm, tm)
    lhs = reps_ref[pl.ds(row0, tm), :]                       # (tm, D)

    # Positive partner rows: global row i pairs with (i + N) mod 2N; with tm | N this
    # is just another contiguous row block.
    pos_blk = jnp.where(b >= half_blocks, b - half_blocks, b + half_blocks)
    pos0 = pl.multiple_of(pos_blk * tm, tm)
    pos = reps_ref[pl.ds(pos0, tm), :]                       # (tm, D)

    # (tm, 2N) logits tile on the MXU; contract dim 1 with dim 1 so no (D, 2N)
    # transposed copy is materialized.
    logits = lax.dot_general(
        lhs, reps_ref[...],
        dimension_numbers=(((1,), (1,)), ((), ())),
        preferred_element_type=jnp.float32)                  # == sim / T

    # Positives and self-similarity (diagonal) via O(tm*D) row products (VPU),
    # instead of (2N,2N) iota + compare + select.
    pos_logit = jnp.sum(lhs * pos, axis=-1, keepdims=True)   # (tm, 1)
    self_logit = jnp.sum(lhs * lhs, axis=-1, keepdims=True)  # (tm, 1), == 1/T

    # logsumexp over all columns except the diagonal, removed algebraically:
    # the diagonal (self) term is the row max, so the shift stays stable.
    row_max = jnp.max(logits, axis=-1, keepdims=True)        # (tm, 1)
    sum_exp = (jnp.sum(jnp.exp(logits - row_max), axis=-1, keepdims=True)
               - jnp.exp(self_logit - row_max))
    lse = jnp.log(sum_exp) + row_max                         # (tm, 1)

    out_ref[...] = lse - pos_logit                           # per-row CE terms


def _choose_row_tile(n):
    """Largest tm <= _TM_MAX with tm % 8 == 0 and tm | n."""
    tm = 0
    for cand in range(8, min(n, _TM_MAX) + 1, 8):
        if n % cand == 0:
            tm = cand
    if tm == 0:
        raise ValueError(f"batch_size={n} must be a multiple of 8")
    return tm


def ntxent_loss(zis, zjs, temperature):
    """zis, zjs: (N, D). Returns scalar f32 loss (matches NTXentLoss.forward)."""
    assert zis.shape == zjs.shape and zis.ndim == 2
    n, dim = zis.shape
    if n % 8 != 0:
        # TODO(synk): pad rows (per half) + mask padded columns/rows to support
        # batch sizes that are not multiples of 8.
        raise ValueError("batch_size must be a multiple of 8")
    two_n = 2 * n

    tm = _choose_row_tile(n)
    num_blocks = two_n // tm
    half_blocks = num_blocks // 2

    cparams = pltpu.CompilerParams(
        dimension_semantics=("parallel",),
        vmem_limit_bytes=_VMEM_LIMIT_BYTES,
    )

    scale = 1.0 / (float(temperature) ** 0.5)  # fold 1/T into both matmul operands

    # Kernel A: fused concat + normalize + temperature fold -> (2N, D) f32.
    reps_s = pl.pallas_call(
        functools.partial(_normalize_kernel, half_blocks=half_blocks, scale=scale),
        out_shape=jax.ShapeDtypeStruct((two_n, dim), jnp.float32),
        grid=(num_blocks,),
        in_specs=[
            pl.BlockSpec((tm, dim), lambda b: (b % half_blocks, 0)),  # zjs
            pl.BlockSpec((tm, dim), lambda b: (b % half_blocks, 0)),  # zis
        ],
        out_specs=pl.BlockSpec((tm, dim), lambda b: (b, 0)),
        compiler_params=cparams,
    )(zjs, zis)

    # Kernel B: row-tiled loss terms.  Output is tiny ((2N,1) f32), so the narrow
    # store is irrelevant; keeping per-row partials lets the grid axis stay parallel.
    per_row = pl.pallas_call(
        functools.partial(_ntxent_row_block_kernel, tm=tm, half_blocks=half_blocks),
        out_shape=jax.ShapeDtypeStruct((two_n, 1), jnp.float32),
        grid=(num_blocks,),
        in_specs=[pl.BlockSpec((two_n, dim), lambda b: (0, 0))],   # resident reps
        out_specs=pl.BlockSpec((tm, 1), lambda b: (b, 0)),
        compiler_params=cparams,
    )(reps_s)

    return jnp.sum(per_row) / jnp.float32(two_n)


def _ntxent_loss_ref(zis, zjs, temperature):
    """Pure-JAX reference mirroring the PyTorch forward, for a sanity check."""
    n = zis.shape[0]
    reps = jnp.concatenate([zjs, zis], axis=0).astype(jnp.float32)
    norms = jnp.linalg.norm(reps, axis=-1, keepdims=True)
    sim = (reps @ reps.T) / jnp.maximum(norms * norms.T, 1e-8)
    two_n = 2 * n
    idx = jnp.arange(two_n)
    pos = sim[idx, (idx + n) % two_n] / temperature
    logits = sim / temperature
    masked = jnp.where(jnp.eye(two_n, dtype=bool), -1e30, logits)
    lse = jax.scipy.special.logsumexp(masked, axis=-1)
    return jnp.sum(lse - pos) / two_n


if __name__ == "__main__":
    batch_size = 8       # N -> 2N = 16 rows (multiple of the 8-row sublane tile)
    dim = 32             # embedding dim
    temperature = 0.5

    key = jax.random.PRNGKey(0)
    k1, k2 = jax.random.split(key)
    zis = jax.random.normal(k1, (batch_size, dim), dtype=jnp.float32)
    zjs = jax.random.normal(k2, (batch_size, dim), dtype=jnp.float32)

    loss = ntxent_loss(zis, zjs, temperature)
    jax.block_until_ready(loss)

    ref = _ntxent_loss_ref(zis, zjs, temperature)
    assert jnp.allclose(loss, ref, rtol=1e-5, atol=1e-5), (loss, ref)

    print("KERNEL_OK")
</pallas_src>

<mosaic_0001>
module attributes {stable_mosaic.version = 11 : i64} {
  func.func @_normalize_kernel(%arg0: i32, %arg1: memref<8x32xf32, #tpu.memory_space<vmem>>, %arg2: memref<8x32xf32, #tpu.memory_space<vmem>>, %arg3: memref<8x32xf32, #tpu.memory_space<vmem>>) attributes {dimension_semantics = [#tpu.dimension_semantics<parallel>], iteration_bounds = array<i64: 2>, scalar_prefetch = 0 : i64, scratch_operands = 0 : i64, tpu.core_type = #tpu.core_type<tc>, window_params = [{transform_indices = @transform_0, window_bounds = array<i64: 8, 32>}, {transform_indices = @transform_1, window_bounds = array<i64: 8, 32>}, {transform_indices = @transform_2, window_bounds = array<i64: 8, 32>}]} {
    %c1_i32 = arith.constant 1 : i32
    %0 = arith.cmpi slt, %arg0, %c1_i32 : i32
    %1 = arith.extui %0 : i1 to i32
    %c0_i32 = arith.constant 0 : i32
    %2 = arith.cmpi ne, %1, %c0_i32 : i32
    scf.if %2 {
      %c0 = arith.constant 0 : index
      %c0_2 = arith.constant 0 : index
      %6 = vector.load %arg1[%c0, %c0_2] : memref<8x32xf32, #tpu.memory_space<vmem>>, vector<8x32xf32>
      %7 = arith.mulf %6, %6 : vector<8x32xf32>
      %cst = arith.constant dense<0.000000e+00> : vector<8xf32>
      %8 = vector.multi_reduction <add>, %7, %cst [1] : vector<8x32xf32> to vector<8xf32>
      %9 = vector.shape_cast %8 : vector<8xf32> to vector<8x1xf32>
      %cst_3 = arith.constant 9.99999993E-9 : f32
      %10 = vector.broadcast %cst_3 : f32 to vector<8x1xf32>
      %11 = arith.maximumf %9, %10 : vector<8x1xf32>
      %12 = math.rsqrt %11 : vector<8x1xf32>
      %cst_4 = arith.constant 1.41421354 : f32
      %13 = vector.broadcast %cst_4 : f32 to vector<8x1xf32>
      %14 = arith.mulf %12, %13 : vector<8x1xf32>
      %15 = vector.broadcast %14 : vector<8x1xf32> to vector<8x32xf32>
      %16 = arith.mulf %6, %15 : vector<8x32xf32>
      %c0_5 = arith.constant 0 : index
      %c0_6 = arith.constant 0 : index
      %17 = vector.load %arg3[%c0_5, %c0_6] : memref<8x32xf32, #tpu.memory_space<vmem>>, vector<8x32xf32>
      tpu.vector_store %arg3[%c0_5, %c0_6], %16 {strides = array<i32>} : memref<8x32xf32, #tpu.memory_space<vmem>>, vector<8x32xf32>,
    } else {
    }
    %c1_i32_0 = arith.constant 1 : i32
    %3 = arith.cmpi sge, %arg0, %c1_i32_0 : i32
    %4 = arith.extui %3 : i1 to i32
    %c0_i32_1 = arith.constant 0 : i32
    %5 = arith.cmpi ne, %4, %c0_i32_1 : i32
    scf.if %5 {
      %c0 = arith.constant 0 : index
      %c0_2 = arith.constant 0 : index
      %6 = vector.load %arg2[%c0, %c0_2] : memref<8x32xf32, #tpu.memory_space<vmem>>, vector<8x32xf32>
      %7 = arith.mulf %6, %6 : vector<8x32xf32>
      %cst = arith.constant dense<0.000000e+00> : vector<8xf32>
      %8 = vector.multi_reduction <add>, %7, %cst [1] : vector<8x32xf32> to vector<8xf32>
      %9 = vector.shape_cast %8 : vector<8xf32> to vector<8x1xf32>
      %cst_3 = arith.constant 9.99999993E-9 : f32
      %10 = vector.broadcast %cst_3 : f32 to vector<8x1xf32>
      %11 = arith.maximumf %9, %10 : vector<8x1xf32>
      %12 = math.rsqrt %11 : vector<8x1xf32>
      %cst_4 = arith.constant 1.41421354 : f32
      %13 = vector.broadcast %cst_4 : f32 to vector<8x1xf32>
      %14 = arith.mulf %12, %13 : vector<8x1xf32>
      %15 = vector.broadcast %14 : vector<8x1xf32> to vector<8x32xf32>
      %16 = arith.mulf %6, %15 : vector<8x32xf32>
      %c0_5 = arith.constant 0 : index
      %c0_6 = arith.constant 0 : index
      %17 = vector.load %arg3[%c0_5, %c0_6] : memref<8x32xf32, #tpu.memory_space<vmem>>, vector<8x32xf32>
      tpu.vector_store %arg3[%c0_5, %c0_6], %16 {strides = array<i32>} : memref<8x32xf32, #tpu.memory_space<vmem>>, vector<8x32xf32>,
    } else {
    }
    return
  }
  func.func @transform_0(%arg0: i32) -> (i32, i32) {
    %c1_i32 = arith.constant 1 : i32
    %c0_i32 = arith.constant 0 : i32
    %0 = arith.cmpi eq, %c1_i32, %c0_i32 : i32
    %c1_i32_0 = arith.constant 1 : i32
    %1 = arith.select %0, %c1_i32_0, %c1_i32 : i32
    %2 = arith.remsi %arg0, %1 : i32
    %c0_i32_1 = arith.constant 0 : i32
    %3 = arith.cmpi ne, %2, %c0_i32_1 : i32
    %c0_i32_2 = arith.constant 0 : i32
    %4 = arith.cmpi slt, %2, %c0_i32_2 : i32
    %c0_i32_3 = arith.constant 0 : i32
    %5 = arith.cmpi slt, %1, %c0_i32_3 : i32
    %6 = arith.xori %4, %5 : i1
    %7 = arith.andi %6, %3 : i1
    %8 = arith.addi %2, %1 : i32
    %9 = arith.select %7, %8, %2 : i32
    %c0_i32_4 = arith.constant 0 : i32
    %c0_i32_5 = arith.constant 0 : i32
    return %9, %c0_i32_4 : i32, i32
  }
  func.func @transform_1(%arg0: i32) -> (i32, i32) {
    %c1_i32 = arith.constant 1 : i32
    %c0_i32 = arith.constant 0 : i32
    %0 = arith.cmpi eq, %c1_i32, %c0_i32 : i32
    %c1_i32_0 = arith.constant 1 : i32
    %1 = arith.select %0, %c1_i32_0, %c1_i32 : i32
    %2 = arith.remsi %arg0, %1 : i32
    %c0_i32_1 = arith.constant 0 : i32
    %3 = arith.cmpi ne, %2, %c0_i32_1 : i32
    %c0_i32_2 = arith.constant 0 : i32
    %4 = arith.cmpi slt, %2, %c0_i32_2 : i32
    %c0_i32_3 = arith.constant 0 : i32
    %5 = arith.cmpi slt, %1, %c0_i32_3 : i32
    %6 = arith.xori %4, %5 : i1
    %7 = arith.andi %6, %3 : i1
    %8 = arith.addi %2, %1 : i32
    %9 = arith.select %7, %8, %2 : i32
    %c0_i32_4 = arith.constant 0 : i32
    %c0_i32_5 = arith.constant 0 : i32
    return %9, %c0_i32_4 : i32, i32
  }
  func.func @transform_2(%arg0: i32) -> (i32, i32) {
    %c0_i32 = arith.constant 0 : i32
    %c0_i32_0 = arith.constant 0 : i32
    return %arg0, %c0_i32 : i32, i32
  }
}

</mosaic_0001>

<bundles_post_ra>
// kernel: tpu_custom_call.1
= control target key start
LH: loop header
LB: loop body
LE: loop exit
PB: predicated region body
PF: predicated region fallthrough
CT: control target
= control target key end

     0   :  { %7 = vsyncpa [#allocation3], 0  ;;  %s613_s0 = inlined_call_operand.hbm [shape: f32[8,32], index: 0, kind: input, shape index: {}]   ;;  %s614_s1 = inlined_call_operand.hbm [shape: f32[8,32], index: 1, kind: input, shape index: {}]   ;;  %s615_s2 = inlined_call_operand.hbm [shape: f32[16,32], index: 2, kind: output, shape index: {}]  }
   0x1   :  { %8 = vsyncpa [#allocation6], 0 }
   0x2   :  { %9 = vsyncpa [#allocation4], 0 }
   0x3   :  { %11 = vsyncpa [#allocation4 + $0x1], 0  ;;  %s479_s9 = smov 0   ;;  %s481_s10 = smov 0  }
   0x4   :  { %s483_s11 = smov 0   ;;  %s485_s12 = smov 0  }
   0x5 LB: > { %s500_s13 = sadd.s32 4294967295, %s459_s12   ;;  %s261_s14 = sadd.s32 4294967294, %s459_s12   ;;  %s459_s12 = sphi %s485_s12, %s633_s12   ;;  %s455_s11 = sphi %s483_s11, %s632_s11   ;;  %s451_s10 = sphi %s481_s10, %s631_s10   ;;  %s447_s9 = sphi %s479_s9, %s630_s9  }
   0x6   : > { %s504_s15 = sadd.s32 1, %s459_s12   ;;  %s66_s16 = sadd.s32 1, %s455_s11 }
   0x7   : > { %s63_s17 = ssub.s32 %s459_s12, %s504_s15  ;;  %p76_p0 = scmp.ne.s32.totalorder %s455_s11, %s451_s10 }
   0x8   : > { %p64_p1 = scmp.eq.s32.totalorder %s63_s17, 0  ;;  %p77_p2 = scmp.eq.s32.totalorder %s500_s13, 1 }
   0x9   : > { %p82_p3 = scmp.ne.s32.totalorder %s451_s10, %s447_s9  ;;  %p83_p4 = scmp.eq.s32.totalorder %s261_s14, 1 }
   0xa   : > { %s515_s18 = scalar_select %p64_p1, %s455_s11, %s66_s16  }
   0xb   : > { %p517_p5 = por %p77_p2, %p76_p0  ;;  %p521_p6 = por %p83_p4, %p82_p3 }
   0xc   : > { %p262_p7 = scmp.ge.s32.totalorder %s459_s12, 1  ;;  %p90_p8 = scmp.lt.s32.totalorder %s459_s12, 3 }
   0xd   : > { %s619_s19 = scalar_select %p517_p5, 1, 0 }
   0xe   : > { %s620_s20 = scalar_select %p521_p6, 1, 0 }
   0xf   : > { %p616_p9 = scmp.eq.s32.totalorder %s500_s13, 0  ;;  %p528_p10 = pnand %p262_p7, %p90_p8 }
  0x10   : > { %s461_s22 = smov [#allocation2]   ;;  %s462_s24 = smov [#allocation5]  }
  0x11   : > { %s621_s21 = scalar_select %p528_p10, 1, 0 }
  0x12   : > { %s103_s23 = sshll.u32 %s461_s22, 4  ;;  %p285_p11 = pneg %p528_p10  ;;  %s104_s23 = int_to_ptr.vmem [resolvable:$true] %s103_s23 }
  0x13   : > { %s114_s25 = sshll.u32 %s462_s24, 4  ;;  %s350_s27 = scalar_lea.vmem %s104_s23, 128  ;;  %s115_s25 = int_to_ptr.vmem [resolvable:$true] %s114_s25 }
  0x14   : > { %p536_p12 = pnand %p616_p9, %p285_p11  ;;  %p351_p0 = scmp.ne.s32.totalorder %s104_s23, %s350_s27 }
  0x15   : > { %p358_p3 = scmp.lt.s32.totalorder %s104_s23, %s104_s23  ;;  %p359_p4 = scmp.lt.s32.totalorder %s350_s27, %s350_s27 }
  0x16   : > { %p341_p13 = pneg %p536_p12 }
  0x17   : > { %p360_p7 = por %p359_p4, %p358_p3 }
  0x18   : > { %p353_p1 = pnand %p351_p0, %p341_p13 }
  0x1a   : > { %p354_p2 = pneg %p353_p1 }
  0x1c   : > { %p361_p8 = pnand %p360_p7, %p354_p2 }
  0x1e   : > { %364 = shalt.err (!%p361_p8)
}
  0x1f   : > { %288 = dma.hbm_to_vmem [thread:$0]  (!%p536_p12), %s613_s0, 128, %s104_s23, [#allocation3]  }
  0x20   : > { %s376_s30 = scalar_lea.vmem %s115_s25, 128  ;;  %p384_p0 = scmp.lt.s32.totalorder %s115_s25, %s115_s25 }
  0x21   : > { %p377_p11 = scmp.ne.s32.totalorder %s115_s25, %s376_s30  ;;  %p385_p1 = scmp.lt.s32.totalorder %s376_s30, %s376_s30 }
  0x23   : > { %p379_p9 = pnand %p377_p11, %p341_p13  ;;  %p386_p5 = por %p385_p1, %p384_p0 }
  0x25   : > { %p380_p6 = pneg %p379_p9 }
  0x27   : > { %p387_p10 = pnand %p386_p5, %p380_p6 }
  0x29   : > { %390 = shalt.err (!%p387_p10)
}
  0x2a   : > { %291 = dma.hbm_to_vmem [thread:$0]  (!%p536_p12), %s614_s1, 128, %s115_s25, [#allocation6]  }
  0x2b   : > { %p623_p2 = scmp.ne.s32.totalorder %s621_s21, 0 }
  0x2c   : > { %p624_p3 = scmp.eq.s32.totalorder (!%p623_p2), %s500_s13, 0 }
  0x2d   : > { %127 = sbr.rel (%p623_p2) target bundleno = 418 (0x1a2), region = 28 }
  0x32   : > { %434 = dma.done.wait (%p624_p3), [#allocation3], 128   ;;  %p625_p13 = pmov %p624_p3 }
  0x33   : > { %p626_p9 = pmov %p624_p3 }
  0x34   : > { %436 = vsyncadd (%p625_p13), [#allocation3], 4294967168 }
  0x35   : > { %438 = dma.done.wait (%p626_p9), [#allocation6], 128   ;;  %p627_p5 = pmov %p624_p3 }
  0x36   : > { %s145_s5 = sand.u32 1, %s451_s10   ;;  %p269_p6 = scmp.ge.s32.totalorder %s500_s13, 1 }
  0x37   : > { %440 = vsyncadd (%p627_p5), [#allocation6], 4294967168  ;;  %s268_s6 = sshll.u32 %s145_s5, 3 }
  0x38   : > { %s571_s7 = scalar_lea.vmem [#allocation7], %s268_s6  ;;  %151 = sbr.rel (%p269_p6) target bundleno = 224 (0xe0), region = 40 }
  0x3d   : > { %v152_v0 = vld [vmem:[#allocation2] sm:$0xff]  ;;  %vm154_vm0 = vcmask 261120  }
  0x3e   : > { %v153_v1 = vmul.f32 %v152_v0, %v152_v0 }
  0x40   : > { %v155_v2 = vsel %vm154_vm0, %v153_v1, 0.0 }
  0x41   : > { %156 = vadd.xlane.f32.xlu0 %v155_v2 }
  0xca   : > { %v157_v3 = vpop.xlane.xlu0 %156 }
  0xcb   : > { %v158_v4 = vmax.f32 %v157_v3, 1e-08 }
  0xcd   : > { %335 = vrsqrt.f32 %v158_v4 }
  0xda   : > { %v336_v5 = vpop.eup %335 }
  0xdb   : > { %v160_v6 = vmul.f32 1.4142135, %v336_v5 }
  0xdd   : > { %v161_v7 = vmul.f32 %v160_v6, %v152_v0 }
  0xdf   : > { %162 = vst.msk [vmem:[%s571_s7] sm:$0xff] %vm154_vm0, %v161_v7 }
  0xe0 PF: > { %p270_p10 = scmp.lt.s32.totalorder %s500_s13, 1 }
  0xe2   : > { %166 = sbr.rel (%p270_p10) target bundleno = 394 (0x18a), region = 44 }
  0xe7   : > { %v167_v8 = vld [vmem:[#allocation5] sm:$0xff]  ;;  %vm169_vm1 = vcmask 261120  }
  0xe8   : > { %v168_v9 = vmul.f32 %v167_v8, %v167_v8 }
  0xea   : > { %v170_v10 = vsel %vm169_vm1, %v168_v9, 0.0 }
  0xeb   : > { %171 = vadd.xlane.f32.xlu0 %v170_v10 }
 0x174   : > { %v172_v11 = vpop.xlane.xlu0 %171 }
 0x175   : > { %v173_v12 = vmax.f32 %v172_v11, 1e-08 }
 0x177   : > { %337 = vrsqrt.f32 %v173_v12 }
 0x184   : > { %v338_v13 = vpop.eup %337 }
 0x185   : > { %v175_v14 = vmul.f32 1.4142135, %v338_v13 }
 0x187   : > { %v176_v15 = vmul.f32 %v175_v14, %v167_v8 }
 0x189   : > { %177 = vst.msk [vmem:[%s571_s7] sm:$0xff] %vm169_vm1, %v176_v15 }
 0x18a PF: > { %s272_s8 = sshll.u32 %s500_s13, 7  ;;  %s192_s21 = sshll.u32 %s571_s7, 4  ;;  %s193_s21 = int_to_ptr.vmem [resolvable:$true] %s192_s21 }
 0x18b   : > { %s190_s17 = scalar_lea.hbm %s615_s2, %s272_s8  ;;  %s179_s22 = scalar_lea.sflag [#allocation4], %s145_s5 }
 0x18c   : > { %s391_s23 = scalar_lea.vmem %s193_s21, 128  ;;  %p628_p4 = scmp.ne.s32.totalorder %s619_s19, 0 }
 0x18d   : > { %p392_p12 = scmp.ne.s32.totalorder %s193_s21, %s391_s23  ;;  %s463_s24 = smov [#allocation7]  }
 0x18e   : > { %s395_s25 = sshll.u32 %s463_s24, 4  ;;  %s396_s25 = int_to_ptr.vmem [resolvable:$false] %s395_s25 }
 0x18f   : > { %p393_p7 = pnand %p392_p12, %p628_p4  ;;  %s397_s26 = scalar_lea.vmem %s396_s25, 256 }
 0x190   : > { %p398_p11 = scmp.lt.s32.totalorder %s193_s21, %s396_s25  ;;  %p399_p0 = scmp.lt.s32.totalorder %s397_s26, %s391_s23 }
 0x191   : > { %p394_p8 = pneg %p393_p7 }
 0x192   : > { %p400_p1 = por %p399_p0, %p398_p11 }
 0x194   : > { %p401_p2 = pnand %p400_p1, %p394_p8 }
 0x196   : > { %404 = shalt.err (!%p401_p2)
}
 0x197   : > { %s405_s13 = scalar_lea.hbm %s190_s17, 128  ;;  %s409_s29 = scalar_lea.hbm %s615_s2, 256 }
 0x198   : > { %p406_p3 = scmp.ne.s32.totalorder %s190_s17, %s405_s13  ;;  %p410_p5 = scmp.lt.s32.totalorder %s190_s17, %s615_s2 }
 0x199   : > { %p411_p6 = scmp.lt.s32.totalorder %s409_s29, %s405_s13 }
 0x19a   : > { %p407_p13 = pnand %p406_p3, %p628_p4 }
 0x19b   : > { %p412_p10 = por %p411_p6, %p410_p5 }
 0x19c   : > { %p408_p9 = pneg %p407_p13 }
 0x19e   : > { %p413_p12 = pnand %p412_p10, %p408_p9 }
 0x1a0   : > { %416 = shalt.err (!%p413_p12)
}
 0x1a1   : > { %283 = dma.vmem_to_hbm [thread:$0]  (%p628_p4), %s193_s21, 128, %s190_s17, %s179_s22  }
 0x1a2 PF: > { %p300_p7 = scmp.ge.s32.totalorder %s459_s12, 2  ;;  %s204_s4 = sand.u32 1, %s447_s9  }
 0x1a3   : > { %p629_p8 = scmp.ne.s32.totalorder %s620_s20, 0  ;;  %s205_s5 = scalar_lea.sflag [#allocation4], %s204_s4 }
 0x1a5   : > { %p293_p11 = pnand %p300_p7, %p629_p8 }
 0x1a7   : > { %p294_p0 = pneg %p293_p11 }
 0x1a9   : > { %442 = dma.done.wait (%p294_p0), %s205_s5, 128  }
 0x1aa   : > { %444 = vsyncadd (%p294_p0), %s205_s5, 4294967168  ;;  %p14_p1 = scmp.ge.s32.totalorder %s504_s15, 4   ;;  %s630_s9 = smov %s451_s10 }
 0x1ab   : > { %s631_s10 = smov %s455_s11  ;;  %s632_s11 = smov %s515_s18 }
 0x1ac   : > { %s633_s12 = smov %s504_s15  ;;  %16 = sbr.rel (!%p14_p1) target bundleno = 5 (0x5), region = 77 }
 0x1b1   :  { %210 = vsyncpa [#allocation3], 1 }
 0x1b2   :  { %212 = vsyncpa [#allocation3 + $0x1], 1 }
 0x1b3   :  { %213 = vsyncpa [#allocation6], 1 }
 0x1b4   :  { %214 = vsyncpa [#allocation4], 1 }
 0x1b5   :  { %216 = vsyncpa [#allocation4 + $0x1], 1 }

</bundles_post_ra>
